<compile_context>
chip_gen: v7x
topology: tpu7x:2x2x1
jax: 0.10.0
libtpu: 0.0.40
codegen_flags: <defaults>
</compile_context>

<pallas_src>
import math

import jax
import jax.numpy as jnp
from jax.experimental import pallas as pl
from jax.experimental.pallas import tpu as pltpu


def _lcm(a, b):
    return a * b // math.gcd(a, b)


# --------------------------------------------------------------------------
# Kernels
# --------------------------------------------------------------------------
def _bilinear_kernel_bcast(x1_ref, wrep_ref, x2_ref, o_ref, x_sc):
    """Broadcast path (input_2 has one more dim than input_1 @ W).

    Kernel-side shapes (input_2 / out flattened to (B, C) with C = S*D2):
      x1_ref   : (TB, D1)
      wrep_ref : (D1, TC)   -- W tiled TC//D2 times along its columns
      x2_ref   : (TB, TC)
      o_ref    : (TB, TC)
      x_sc     : (TB, TC) f32 scratch holding (x1 @ W) replicated along lanes
    Grid = (B tiles, C tiles); C is the innermost axis, so the matmul runs once
    per B tile and is reused for all C tiles of that B tile.
    """
    @pl.when(pl.program_id(1) == 0)
    def _():
        x_sc[...] = jnp.dot(x1_ref[...], wrep_ref[...],
                            preferred_element_type=jnp.float32)

    # Elementwise work in f32 (v5e has no bf16 VPU/EUP); cast only on store.
    prod = x_sc[...] * x2_ref[...].astype(jnp.float32)
    o_ref[...] = jnp.tanh(prod).astype(o_ref.dtype)


def _bilinear_kernel_same(x1_ref, w_ref, x2_ref, o_ref):
    """Same-rank path: input_1 (TB, D1), input_2 (TB, D2) -> out (TB, D2)."""
    x = jnp.dot(x1_ref[...], w_ref[...], preferred_element_type=jnp.float32)
    o_ref[...] = jnp.tanh(x * x2_ref[...].astype(jnp.float32)).astype(o_ref.dtype)


# --------------------------------------------------------------------------
# Tile selection
# --------------------------------------------------------------------------
def _pick_tb(B, max_tb=256):
    """Rows per tile.  Full dim for small B (always legal), else a multiple of 8."""
    return B if B <= max_tb else max_tb


def _pick_tc(C, D2, TB, elem_bytes, block_budget_bytes, max_rep=32):
    """Flattened (S*D2) columns per tile.

    TC is a multiple of D2 (so the replicated x aligns across C tiles) and of
    128 (lane-dense stores), bounded both by a per-block VMEM budget (keeps the
    double-buffered tiles within the v7x 64 MiB VMEM) and by a cap on how many
    times W is replicated (bounds redundant MXU work — hidden anyway since the
    dot runs once per B tile).
    """
    unit = _lcm(D2, 128)                 # smallest lane-dense multiple of D2
    if unit > C:
        return C                         # tiny case: full-extent block (legal)
    budget_elems = max(block_budget_bytes // (max(TB, 1) * elem_bytes), unit)
    cap = min(budget_elems, max_rep * D2, (C // unit) * unit)
    tc = max((cap // unit) * unit, unit)
    return int(tc)


# --------------------------------------------------------------------------
# Wrapper
# --------------------------------------------------------------------------
def bilinear_forward(input_1, weights, input_2, *, block_budget_bytes=4 << 20):
    """Exact semantics of Bilinear.forward for 2-D input_1."""
    assert input_1.ndim == 2, "this kernel supports 2-D input_1 (B, D1)"
    # TODO(synk): higher-rank input_1 (torch matmul broadcasting) not implemented.
    B, D1 = input_1.shape
    assert weights.shape[0] == D1
    D2 = weights.shape[1]

    if input_2.ndim == input_1.ndim:
        # -------- same-rank path: no unsqueeze, everything is (B, D2) --------
        assert input_2.shape == (B, D2)
        TB = _pick_tb(B)
        nb = pl.cdiv(B, TB)
        return pl.pallas_call(
            _bilinear_kernel_same,
            out_shape=jax.ShapeDtypeStruct((B, D2), input_2.dtype),
            grid=(nb,),
            in_specs=[
                pl.BlockSpec((TB, D1), lambda i: (i, 0)),
                pl.BlockSpec((D1, D2), lambda i: (0, 0)),
                pl.BlockSpec((TB, D2), lambda i: (i, 0)),
            ],
            out_specs=pl.BlockSpec((TB, D2), lambda i: (i, 0)),
            compiler_params=pltpu.CompilerParams(
                dimension_semantics=("parallel",)),
        )(input_1, weights, input_2)

    # ---------------- broadcast path: input_2 is (B, S, D2) ----------------
    assert input_2.ndim == 3
    B2, S, D2_2 = input_2.shape
    assert B2 == B and D2_2 == D2

    # Flatten (S, D2) -> C so output stores are lane-dense (last dim mult of 128).
    C = S * D2
    x2_flat = input_2.reshape(B, C)

    elem_bytes = jnp.dtype(input_2.dtype).itemsize
    TB = _pick_tb(B)
    TC = _pick_tc(C, D2, TB, elem_bytes, block_budget_bytes)
    rep = TC // D2

    # Pre-replicate the tiny weight along its columns once (layout plumbing,
    # not compute hoisting) so the in-kernel dot yields the (TB, TC) slab.
    w_rep = jnp.tile(weights, (1, rep))                       # (D1, TC)

    nb = pl.cdiv(B, TB)
    nc = pl.cdiv(C, TC)

    # Explicit VMEM budget: double-buffered x2/out tiles + resident x1/W tiles
    # + f32 scratch; capped at 48 MiB (safe on v7x's 64 MiB physical VMEM).
    needed = (2 * 2 * TB * TC * elem_bytes
              + 2 * TB * D1 * jnp.dtype(input_1.dtype).itemsize
              + 2 * D1 * TC * jnp.dtype(weights.dtype).itemsize
              + TB * TC * 4)
    vmem_limit = int(min(max(needed + (4 << 20), 16 << 20), 48 << 20))

    out_flat = pl.pallas_call(
        _bilinear_kernel_bcast,
        out_shape=jax.ShapeDtypeStruct((B, C), input_2.dtype),
        grid=(nb, nc),
        in_specs=[
            pl.BlockSpec((TB, D1), lambda i, j: (i, 0)),
            pl.BlockSpec((D1, TC), lambda i, j: (0, 0)),
            pl.BlockSpec((TB, TC), lambda i, j: (i, j)),
        ],
        out_specs=pl.BlockSpec((TB, TC), lambda i, j: (i, j)),
        scratch_shapes=[pltpu.VMEM((TB, TC), jnp.float32)],
        compiler_params=pltpu.CompilerParams(
            dimension_semantics=("parallel", "arbitrary"),
            vmem_limit_bytes=vmem_limit),
    )(input_1, w_rep, x2_flat)

    return out_flat.reshape(B, S, D2)


def reference_forward(input_1, weights, input_2):
    x = jnp.matmul(input_1, weights)
    if x.ndim != input_2.ndim:
        x = x[:, None, :]
    return jnp.tanh(x * input_2)


# --------------------------------------------------------------------------
# Demo / self-check
# --------------------------------------------------------------------------
if __name__ == "__main__":
    key = jax.random.PRNGKey(0)
    k_w, k_x1, k_x2, k_w2, k_x3, k_x4, k_x5 = jax.random.split(key, 7)

    # Small shapes consistent with the module's forward.
    B, S = 2, 8
    input1_dim, input2_dim = 32, 32

    # Deterministic parameter init mirroring the PyTorch module:
    # uniform(-1/sqrt(input2_dim), +1/sqrt(input2_dim))
    bound = 1.0 / math.sqrt(input2_dim)
    weights = jax.random.uniform(
        k_w, (input1_dim, input2_dim), dtype=jnp.float32,
        minval=-bound, maxval=bound)

    input_1 = jax.random.normal(k_x1, (B, input1_dim), dtype=jnp.float32)
    input_2 = jax.random.normal(k_x2, (B, S, input2_dim), dtype=jnp.float32)

    out = bilinear_forward(input_1, weights, input_2)
    out = jax.block_until_ready(out)
    ref = reference_forward(input_1, weights, input_2)
    assert out.shape == ref.shape == (B, S, input2_dim)
    assert jnp.allclose(out, ref, atol=1e-5, rtol=1e-5), "broadcast-path mismatch"

    # Slightly larger shapes: exercises multiple C tiles (scratch reuse across
    # the inner grid axis) on the broadcast path.
    B2_, S2_, D1_, D2_ = 16, 64, 48, 32
    w2 = jax.random.uniform(k_w2, (D1_, D2_), dtype=jnp.float32,
                            minval=-bound, maxval=bound)
    x1b = jax.random.normal(k_x3, (B2_, D1_), dtype=jnp.float32)
    x2b = jax.random.normal(k_x4, (B2_, S2_, D2_), dtype=jnp.float32)
    out_b = jax.block_until_ready(bilinear_forward(x1b, w2, x2b))
    ref_b = reference_forward(x1b, w2, x2b)
    assert jnp.allclose(out_b, ref_b, atol=1e-5, rtol=1e-5), "tiled-path mismatch"

    # Same-rank (no unsqueeze) path.
    x2c = jax.random.normal(k_x5, (B, input2_dim), dtype=jnp.float32)
    out_c = jax.block_until_ready(bilinear_forward(input_1, weights, x2c))
    ref_c = reference_forward(input_1, weights, x2c)
    assert jnp.allclose(out_c, ref_c, atol=1e-5, rtol=1e-5), "same-rank mismatch"

    print("KERNEL_OK")
</pallas_src>

<mosaic_0001>
module attributes {stable_mosaic.version = 11 : i64} {
  func.func @_bilinear_kernel_bcast(%arg0: i32, %arg1: i32, %arg2: memref<2x32xf32, #tpu.memory_space<vmem>>, %arg3: memref<32x256xf32, #tpu.memory_space<vmem>>, %arg4: memref<2x256xf32, #tpu.memory_space<vmem>>, %arg5: memref<2x256xf32, #tpu.memory_space<vmem>>, %arg6: memref<2x256xf32, #tpu.memory_space<vmem>>) attributes {dimension_semantics = [#tpu.dimension_semantics<parallel>, #tpu.dimension_semantics<arbitrary>], iteration_bounds = array<i64: 1, 1>, scalar_prefetch = 0 : i64, scratch_operands = 1 : i64, tpu.core_type = #tpu.core_type<tc>, window_params = [{transform_indices = @transform_0, window_bounds = array<i64: 2, 32>}, {pipeline_mode = #tpu.pipeline_mode<synchronous>, transform_indices = @transform_1, window_bounds = array<i64: 32, 256>}, {transform_indices = @transform_2, window_bounds = array<i64: 2, 256>}, {transform_indices = @transform_3, window_bounds = array<i64: 2, 256>}]} {
    %c0_i32 = arith.constant 0 : i32
    %0 = arith.cmpi eq, %arg1, %c0_i32 : i32
    %1 = arith.extui %0 : i1 to i32
    %c0_i32_0 = arith.constant 0 : i32
    %2 = arith.cmpi ne, %1, %c0_i32_0 : i32
    scf.if %2 {
      %c0_6 = arith.constant 0 : index
      %c0_7 = arith.constant 0 : index
      %8 = vector.load %arg2[%c0_6, %c0_7] : memref<2x32xf32, #tpu.memory_space<vmem>>, vector<2x32xf32>
      %c0_8 = arith.constant 0 : index
      %c0_9 = arith.constant 0 : index
      %9 = vector.load %arg3[%c0_8, %c0_9] : memref<32x256xf32, #tpu.memory_space<vmem>>, vector<32x256xf32>
      %cst = arith.constant dense<0.000000e+00> : vector<2x256xf32>
      %10 = tpu.matmul %8, %9, %cst {dimension_numbers = #tpu.dot_dimension_numbers<[1], [0], [0], [1], [0, 0, 1, 1], [], []>} : vector<2x32xf32>, vector<32x256xf32>, vector<2x256xf32> -> vector<2x256xf32>
      %c0_10 = arith.constant 0 : index
      %c0_11 = arith.constant 0 : index
      %11 = vector.load %arg6[%c0_10, %c0_11] : memref<2x256xf32, #tpu.memory_space<vmem>>, vector<2x256xf32>
      tpu.vector_store %arg6[%c0_10, %c0_11], %10 {strides = array<i32>} : memref<2x256xf32, #tpu.memory_space<vmem>>, vector<2x256xf32>,
    } else {
    }
    %c0 = arith.constant 0 : index
    %c0_1 = arith.constant 0 : index
    %3 = vector.load %arg6[%c0, %c0_1] : memref<2x256xf32, #tpu.memory_space<vmem>>, vector<2x256xf32>
    %c0_2 = arith.constant 0 : index
    %c0_3 = arith.constant 0 : index
    %4 = vector.load %arg4[%c0_2, %c0_3] : memref<2x256xf32, #tpu.memory_space<vmem>>, vector<2x256xf32>
    %5 = arith.mulf %3, %4 : vector<2x256xf32>
    %6 = math.tanh %5 : vector<2x256xf32>
    %c0_4 = arith.constant 0 : index
    %c0_5 = arith.constant 0 : index
    %7 = vector.load %arg5[%c0_4, %c0_5] : memref<2x256xf32, #tpu.memory_space<vmem>>, vector<2x256xf32>
    tpu.vector_store %arg5[%c0_4, %c0_5], %6 {strides = array<i32>} : memref<2x256xf32, #tpu.memory_space<vmem>>, vector<2x256xf32>,
    return
  }
  func.func @transform_0(%arg0: i32, %arg1: i32) -> (i32, i32) {
    %c0_i32 = arith.constant 0 : i32
    %c0_i32_0 = arith.constant 0 : i32
    return %arg0, %c0_i32 : i32, i32
  }
  func.func @transform_1(%arg0: i32, %arg1: i32) -> (i32, i32) {
    %c0_i32 = arith.constant 0 : i32
    %c0_i32_0 = arith.constant 0 : i32
    %c0_i32_1 = arith.constant 0 : i32
    return %c0_i32, %c0_i32_0 : i32, i32
  }
  func.func @transform_2(%arg0: i32, %arg1: i32) -> (i32, i32) {
    %c0_i32 = arith.constant 0 : i32
    return %arg0, %arg1 : i32, i32
  }
  func.func @transform_3(%arg0: i32, %arg1: i32) -> (i32, i32) {
    %c0_i32 = arith.constant 0 : i32
    return %arg0, %arg1 : i32, i32
  }
}

</mosaic_0001>

<bundles_post_ra>
// kernel: tpu_custom_call.1
= control target key start
LH: loop header
LB: loop body
LE: loop exit
PB: predicated region body
PF: predicated region fallthrough
CT: control target
= control target key end

     0   :  { %8 = vsyncpa [#allocation4], 0  ;;  %s324_s0 = inlined_call_operand.hbm [shape: f32[2,32], index: 0, kind: input, shape index: {}]   ;;  %s325_s1 = inlined_call_operand.hbm [shape: f32[32,256], index: 1, kind: input, shape index: {}]   ;;  %s326_s2 = inlined_call_operand.vmem [shape: f32[2,256], index: 2, kind: input, shape index: {}]   ;;  %s327_s3 = inlined_call_operand.hbm [shape: f32[2,256], index: 3, kind: output, shape index: {}]  }
   0x1   :  { %9 = vsyncpa [#allocation7], 0 }
   0x2   :  { %10 = vsyncpa [#allocation5], 0  ;;  %s252_s12 = smov [#allocation3]   ;;  %s253_s14 = smov [#allocation6]  }
   0x3   :  { %s17_s13 = sshll.u32 %s252_s12, 4  ;;  %s26_s15 = sshll.u32 %s253_s14, 4  ;;  %s18_s13 = int_to_ptr.vmem [resolvable:$true] %s17_s13  ;;  %s278_s15 = int_to_ptr.vmem [resolvable:$true] %s26_s15 }
   0x4   :  { %s180_s18 = scalar_lea.hbm %s324_s0, 32 }
   0x5   :  { %p181_p0 = scmp.ne.s32.totalorder %s324_s0, %s180_s18  ;;  %p184_p1 = scmp.lt.u32.totalorder %s180_s18, %s324_s0 }
   0x7   :  { %p186_p2 = pnand %p184_p1, %p181_p0 }
   0x9   :  { %189 = shalt.err (!%p186_p2)
}
   0xa   :  { %s190_s23 = scalar_lea.vmem %s18_s13, 32  ;;  %p195_p4 = scmp.lt.s32.totalorder %s18_s13, %s18_s13 }
   0xb   :  { %p191_p3 = scmp.ne.s32.totalorder %s18_s13, %s190_s23  ;;  %p196_p5 = scmp.lt.s32.totalorder %s190_s23, %s190_s23 }
   0xd   :  { %p197_p6 = por %p196_p5, %p195_p4 }
   0xf   :  { %p198_p7 = pnand %p197_p6, %p191_p3 }
  0x11   :  { %201 = shalt.err (!%p198_p7)
}
  0x12   :  { %20 = dma.hbm_to_vmem [thread:$0]  %s324_s0, 32, %s18_s13, [#allocation4]  }
  0x13   :  { %s202_s28 = scalar_lea.hbm %s325_s1, 1024 }
  0x14   :  { %p203_p8 = scmp.ne.s32.totalorder %s325_s1, %s202_s28  ;;  %p206_p9 = scmp.lt.u32.totalorder %s202_s28, %s325_s1 }
  0x16   :  { %p208_p10 = pnand %p206_p9, %p203_p8 }
  0x18   :  { %211 = shalt.err (!%p208_p10)
}
  0x19   :  { %s212_s6 = scalar_lea.vmem %s278_s15, 1024  ;;  %p217_p12 = scmp.lt.s32.totalorder %s278_s15, %s278_s15 }
  0x1a   :  { %p213_p11 = scmp.ne.s32.totalorder %s278_s15, %s212_s6  ;;  %p218_p13 = scmp.lt.s32.totalorder %s212_s6, %s212_s6 }
  0x1c   :  { %p219_p0 = por %p218_p13, %p217_p12 }
  0x1e   :  { %p220_p1 = pnand %p219_p0, %p213_p11 }
  0x20   :  { %223 = shalt.err (!%p220_p1)
}
  0x21   :  { %s254_s0 = smov 256   ;;  %s255_s7 = smov 16  }
  0x22   :  { %32 = dma.hbm_to_vmem [thread:$0]  %s325_s1, 1024, %s278_s15, [#allocation7], %s254_s0, %s254_s0, %s255_s7  }
  0x23   :  { %246 = dma.done.wait [#allocation4], 32  }
  0x24   :  { %247 = vsyncadd [#allocation4], 4294967264 }
  0x25   :  { %248 = dma.done.wait [#allocation7], 1024  }
  0x26   :  { %249 = vsyncadd [#allocation7], 4294966272  ;;  %v256_v0 = vmov 0.0   ;;  %v47_v1 = vld [vmem:[#allocation6 + $0x8] sm:$0xff]  ;;  %v49_v2 = vld [vmem:[#allocation6 + $0x18] sm:$0xff]  ;;  %vm54_vm0 = vcmask 261120  }
  0x27   :  { %122 = vmatprep.mubr.f32.mxu0 %v256_v0  ;;  %v46_v3 = vld [vmem:[#allocation6] sm:$0xff]  ;;  %v164_v4 = vpack.c.bf16 %v49_v2, %v47_v1  ;;  %v48_v5 = vld [vmem:[#allocation6 + $0x10] sm:$0xff]  ;;  %v51_v6 = vld [vmem:[#allocation6 + $0x28] sm:$0xff]  ;;  %s257_s11 = smov [#allocation8]  }
  0x28   :  { %v53_v7 = vld [vmem:[#allocation6 + $0x38] sm:$0xff]  ;;  %v166_v8 = vpack.c.bf16 %v48_v5, %v46_v3  ;;  %v50_v10 = vld [vmem:[#allocation6 + $0x20] sm:$0xff]  ;;  %v52_v11 = vld [vmem:[#allocation6 + $0x30] sm:$0xff]  ;;  %s152_s12 = sshll.u32 %s257_s11, 4  ;;  %s153_s12 = int_to_ptr.vmem [resolvable:$true] %s152_s12 }
  0x29   :  { %v168_v9 = vpack.c.bf16 %v53_v7, %v51_v6  ;;  %165 = vmatprep.subr.bf16.mxu0 %v164_v4  ;;  %v170_v12 = vpack.c.bf16 %v52_v11, %v50_v10  ;;  %v45_v13 = vld [vmem:[#allocation3] sm:$0x3]  ;;  %v142_v17 = vld [vmem:[%s326_s2] sm:$0xf]  ;;  %s224_s13 = scalar_lea.vmem %s153_s12, 64  ;;  %p229_p3 = scmp.lt.s32.totalorder %s153_s12, %s153_s12 }
  0x2a   :  { %167 = vmatpush1.bf16.msra.mxu0 %v166_v8  ;;  %p225_p2 = scmp.ne.s32.totalorder %s153_s12, %s224_s13  ;;  %p230_p4 = scmp.lt.s32.totalorder %s224_s13, %s224_s13 }
  0x2b   :  { %169 = vmatprep.subr.bf16.mxu0 %v168_v9 }
  0x2c   :  { %p231_p5 = por %p230_p4, %p229_p3 }
  0x2e   :  { %171 = vmatpush1.bf16.msra.mxu0 %v170_v12  ;;  %p232_p6 = pnand %p231_p5, %p225_p2 }
  0x31   :  { %162 = vmatmul.mubr.msk.f32.vlgmr.msra.gmra.mrb[0].mxu0 %vm54_vm0, %v45_v13 }
 0x104   :  { %v124_v14 = vpop.f32.mrb[0].mxu0 }
 0x105   :  { %v126_v15 = vpop.f32.mrb[1].mxu0 }
 0x106   :  { %v131_v16 = vcombine.low %v124_v14, %v126_v15 }
 0x108   :  { %163 = vst.sshfl [vmem:[#allocation2] sm:$0x33 pattern:$0x76325410] %v131_v16 }
 0x10f   :  { %v141_v18 = vld [vmem:[#allocation2] sm:$0xf] }
 0x110   :  { %v143_v19 = vmul.f32 %v142_v17, %v141_v18 }
 0x112   :  { %178 = vtanh.f32 %v143_v19 }
 0x11c   :  { %v179_v20 = vpop.eup %178 }
 0x11d   :  { %145 = vst [vmem:[#allocation8] sm:$0xf] %v179_v20 }
 0x11e   :  { %235 = shalt.err (!%p232_p6)
}
 0x11f   :  { %s236_s16 = scalar_lea.hbm %s327_s3, 64 }
 0x120   :  { %p237_p7 = scmp.ne.s32.totalorder %s327_s3, %s236_s16  ;;  %p240_p8 = scmp.lt.u32.totalorder %s236_s16, %s327_s3 }
 0x122   :  { %p242_p9 = pnand %p240_p8, %p237_p7 }
 0x124   :  { %245 = shalt.err (!%p242_p9)
}
 0x125   :  { %155 = dma.vmem_to_hbm [thread:$0]  %s153_s12, 64, %s327_s3, [#allocation5]  }
 0x126   :  { %250 = dma.done.wait [#allocation5], 64  }
 0x127   :  { %251 = vsyncadd [#allocation5], 4294967232 }
 0x128   :  { %159 = vsyncpa [#allocation4], 1 }
 0x129   :  { %160 = vsyncpa [#allocation7], 1 }
 0x12a   :  { %161 = vsyncpa [#allocation5], 1 }

</bundles_post_ra>
